<compile_context>
chip_gen: v7x
topology: tpu7x:2x2x1
jax: 0.10.0
libtpu: 0.0.40
codegen_flags: <defaults>
</compile_context>

<pallas_src>
import functools
import math

import jax
import jax.numpy as jnp
from jax.experimental import pallas as pl
from jax.experimental.pallas import tpu as pltpu


# ----------------------------------------------------------------------------
# Pallas kernel: mid/cond/output 1x1-conv projections (split gate/filter and
# residual/skip halves), sigmoid*tanh gating, residual/skip epilogue.
# ----------------------------------------------------------------------------
def ema_resblock_kernel(
    x_ref,       # (1, C, TN)  bf16
    cond_ref,    # (1, Cs, TN) bf16
    bg_ref,      # (1, C, 1)   f32  per-batch gate   bias = (bmid+bcond+wmid@demb)[:C]
    bf_ref,      # (1, C, 1)   f32  per-batch filter bias = (bmid+bcond+wmid@demb)[C:]
    wgx_ref,     # (C, C)  bf16  gate   half of mid_projection weight
    wfx_ref,     # (C, C)  bf16  filter half of mid_projection weight
    wgc_ref,     # (C, Cs) bf16  gate   half of cond_projection weight
    wfc_ref,     # (C, Cs) bf16  filter half of cond_projection weight
    wr_ref,      # (C, C)  bf16  residual half of output_projection weight
    ws_ref,      # (C, C)  bf16  skip     half of output_projection weight
    br_ref,      # (C, 1)  f32   residual half of output_projection bias
    bs_ref,      # (C, 1)  f32   skip     half of output_projection bias
    res_ref,     # (1, C, TN)  output: (x + residual) / sqrt(2)
    skip_ref,    # (1, C, TN)  output: skip
):
    x = x_ref[0]            # (C, TN)  bf16
    cond = cond_ref[0]      # (Cs, TN) bf16

    # TODO(synk): MegaEncoderLayer time_layer / feat_layer would transform
    # (x + diffusion_emb) before mid_projection in the original module;
    # identity passthrough here (see header comment).

    # mid_projection(x [+ demb folded into bias]) + cond_projection(cond),
    # gate and filter halves computed directly (no (2C, TN) intermediate).
    gate = (jnp.dot(wgx_ref[...], x, preferred_element_type=jnp.float32)
            + jnp.dot(wgc_ref[...], cond, preferred_element_type=jnp.float32)
            + bg_ref[0])
    filt = (jnp.dot(wfx_ref[...], x, preferred_element_type=jnp.float32)
            + jnp.dot(wfc_ref[...], cond, preferred_element_type=jnp.float32)
            + bf_ref[0])

    g = jax.nn.sigmoid(gate) * jnp.tanh(filt)          # f32 (C, TN)
    g16 = g.astype(wr_ref.dtype)                       # bf16 for MXU

    residual = (jnp.dot(wr_ref[...], g16, preferred_element_type=jnp.float32)
                + br_ref[...])
    skip = (jnp.dot(ws_ref[...], g16, preferred_element_type=jnp.float32)
            + bs_ref[...])

    inv_sqrt2 = jnp.float32(1.0 / math.sqrt(2.0))
    res_ref[0] = ((x.astype(jnp.float32) + residual) * inv_sqrt2).astype(res_ref.dtype)
    skip_ref[0] = skip.astype(skip_ref.dtype)


def _choose_tn(N, max_tn):
    """Largest multiple-of-128 divisor of N that is <= max_tn; falls back to N."""
    if N < 128 or N % 128 != 0:
        return N
    best = 128
    t = 128
    while t <= min(N, max_tn):
        if N % t == 0:
            best = t
        t += 128
    return best


def ema_residual_block_forward(x, cond_info, diffusion_emb, params,
                               *, max_tn=512, out_dtype=jnp.bfloat16):
    """x: (B, C, K, L), cond_info: (B, Cs, K, L), diffusion_emb: (B, E)."""
    B, C, K, L = x.shape
    Cs = cond_info.shape[1]
    N = K * L

    compute_dtype = jnp.bfloat16
    x_flat = x.reshape(B, C, N).astype(compute_dtype)
    cond_flat = cond_info.reshape(B, Cs, N).astype(compute_dtype)

    # Fold diffusion projection + mid/cond biases into one per-batch bias pair:
    #   wmid @ (x + demb) + bmid + bcond  ==  wmid @ x + (wmid @ demb + bmid + bcond)
    wmid = params["w_mid"]                                          # (2C, C)
    demb = diffusion_emb @ params["w_diff"].T + params["b_diff"]    # (B, C)
    bias_all = demb @ wmid.T + params["b_mid"] + params["b_cond"]   # (B, 2C)
    bias_g = bias_all[:, :C].reshape(B, C, 1).astype(jnp.float32)
    bias_f = bias_all[:, C:].reshape(B, C, 1).astype(jnp.float32)

    wgx = wmid[:C].astype(compute_dtype)
    wfx = wmid[C:].astype(compute_dtype)
    wcond = params["w_cond"]
    wgc = wcond[:C].astype(compute_dtype)
    wfc = wcond[C:].astype(compute_dtype)
    wout = params["w_out"]
    wr = wout[:C].astype(compute_dtype)
    ws = wout[C:].astype(compute_dtype)
    br = params["b_out"][:C].reshape(C, 1).astype(jnp.float32)
    bs = params["b_out"][C:].reshape(C, 1).astype(jnp.float32)

    # Lane tiling. Sweep max_tn in 512..2048 per generation; halve for v7x
    # (64 MiB physical VMEM vs 128 MiB on v5e/v6e).
    TN = _choose_tn(N, max_tn)
    n_tiles = N // TN

    # Explicit scoped-VMEM budget: double-buffered I/O tiles + resident weights
    # + in-flight f32 temps, with headroom, capped safely below physical VMEM.
    bf16_b, f32_b = 2, 4
    out_b = jnp.dtype(out_dtype).itemsize
    tile_io = (C + Cs) * TN * bf16_b + 2 * C * TN * out_b + 2 * C * f32_b
    weights_b = (2 * C * C + 2 * C * Cs + 2 * C * C) * bf16_b + 2 * C * f32_b
    temps_b = 4 * C * TN * f32_b
    vmem_limit = int(min(32 << 20, max(4 << 20,
                                       4 * (2 * (tile_io + weights_b) + temps_b))))

    full2d = lambda arr: pl.BlockSpec(arr.shape, lambda b, n: (0, 0))

    res, skip = pl.pallas_call(
        ema_resblock_kernel,
        out_shape=(
            jax.ShapeDtypeStruct((B, C, N), out_dtype),
            jax.ShapeDtypeStruct((B, C, N), out_dtype),
        ),
        grid=(B, n_tiles),
        in_specs=[
            pl.BlockSpec((1, C, TN), lambda b, n: (b, 0, n)),
            pl.BlockSpec((1, Cs, TN), lambda b, n: (b, 0, n)),
            pl.BlockSpec((1, C, 1), lambda b, n: (b, 0, 0)),
            pl.BlockSpec((1, C, 1), lambda b, n: (b, 0, 0)),
            full2d(wgx), full2d(wfx),
            full2d(wgc), full2d(wfc),
            full2d(wr), full2d(ws),
            full2d(br), full2d(bs),
        ],
        out_specs=(
            pl.BlockSpec((1, C, TN), lambda b, n: (b, 0, n)),
            pl.BlockSpec((1, C, TN), lambda b, n: (b, 0, n)),
        ),
        compiler_params=pltpu.CompilerParams(
            dimension_semantics=("parallel", "parallel"),
            vmem_limit_bytes=vmem_limit,
        ),
    )(x_flat, cond_flat, bias_g, bias_f, wgx, wfx, wgc, wfc, wr, ws, br, bs)

    return res.reshape(B, C, K, L), skip.reshape(B, C, K, L)


# ----------------------------------------------------------------------------
# Deterministic parameter init (shapes from the module's __init__).
# ----------------------------------------------------------------------------
def init_params(key, side_dim, channels, diffusion_embedding_dim):
    ks = jax.random.split(key, 8)

    def kaiming(k, out_c, in_c):
        # Conv1d kernel_size = 1 -> fan_in = in_c
        std = math.sqrt(2.0 / in_c)
        return jax.random.normal(k, (out_c, in_c), jnp.float32) * std

    return {
        # nn.Linear(diffusion_embedding_dim, channels)
        "w_diff": jax.random.normal(ks[0], (channels, diffusion_embedding_dim), jnp.float32) * 0.05,
        "b_diff": jax.random.normal(ks[1], (channels,), jnp.float32) * 0.05,
        # Conv1d(side_dim, 2*channels, 1)
        "w_cond": kaiming(ks[2], 2 * channels, side_dim),
        "b_cond": jax.random.normal(ks[3], (2 * channels,), jnp.float32) * 0.05,
        # Conv1d(channels, 2*channels, 1)
        "w_mid": kaiming(ks[4], 2 * channels, channels),
        "b_mid": jax.random.normal(ks[5], (2 * channels,), jnp.float32) * 0.05,
        # Conv1d(channels, 2*channels, 1)
        "w_out": kaiming(ks[6], 2 * channels, channels),
        "b_out": jax.random.normal(ks[7], (2 * channels,), jnp.float32) * 0.05,
    }


# Pure-JAX reference (mega layers identity, same bf16 input casting) for check.
def reference_forward(x, cond_info, diffusion_emb, params):
    B, C, K, L = x.shape
    N = K * L
    bf = lambda a: a.astype(jnp.bfloat16).astype(jnp.float32)
    x_flat = bf(x.reshape(B, C, N))
    cond_flat = bf(cond_info.reshape(B, cond_info.shape[1], N))
    demb = (diffusion_emb @ params["w_diff"].T + params["b_diff"])[:, :, None]
    y = x_flat + demb
    # TODO(synk): time_layer / feat_layer (MegaEncoderLayer) treated as identity.
    mid = jnp.einsum("oc,bcn->bon", bf(params["w_mid"]), y) + params["b_mid"][None, :, None]
    cv = jnp.einsum("oc,bcn->bon", bf(params["w_cond"]), cond_flat) + params["b_cond"][None, :, None]
    z = mid + cv
    gate, filt = z[:, :C], z[:, C:]
    g = jax.nn.sigmoid(gate) * jnp.tanh(filt)
    out = jnp.einsum("oc,bcn->bon", bf(params["w_out"]), g) + params["b_out"][None, :, None]
    residual, skip = out[:, :C], out[:, C:]
    res = (x_flat + residual) / math.sqrt(2.0)
    return res.reshape(B, C, K, L), skip.reshape(B, C, K, L)


if __name__ == "__main__":
    B, C, K, L = 2, 8, 8, 128          # N = K*L = 1024 -> two 512-lane tiles
    side_dim = 16
    diffusion_embedding_dim = 32

    key = jax.random.PRNGKey(0)
    k_x, k_c, k_d, k_p = jax.random.split(key, 4)

    x = jax.random.normal(k_x, (B, C, K, L), jnp.float32)
    cond_info = jax.random.normal(k_c, (B, side_dim, K, L), jnp.float32)
    diffusion_emb = jax.random.normal(k_d, (B, diffusion_embedding_dim), jnp.float32)
    params = init_params(k_p, side_dim, C, diffusion_embedding_dim)

    fwd = jax.jit(functools.partial(ema_residual_block_forward, max_tn=512))
    res, skip = jax.block_until_ready(fwd(x, cond_info, diffusion_emb, params))

    res_ref, skip_ref = reference_forward(x, cond_info, diffusion_emb, params)
    # bf16 matmul inputs + bf16 outputs -> relaxed tolerance vs. f32-math ref.
    assert jnp.allclose(res.astype(jnp.float32), res_ref, atol=3e-2, rtol=3e-2)
    assert jnp.allclose(skip.astype(jnp.float32), skip_ref, atol=3e-2, rtol=3e-2)

    print("KERNEL_OK")
</pallas_src>

<mosaic_0001>
module attributes {stable_mosaic.version = 11 : i64} {
  func.func @ema_resblock_kernel(%arg0: i32, %arg1: i32, %arg2: memref<1x8x512xbf16, #tpu.memory_space<vmem>>, %arg3: memref<1x16x512xbf16, #tpu.memory_space<vmem>>, %arg4: memref<1x8x1xf32, #tpu.memory_space<vmem>>, %arg5: memref<1x8x1xf32, #tpu.memory_space<vmem>>, %arg6: memref<8x8xbf16, #tpu.memory_space<vmem>>, %arg7: memref<8x8xbf16, #tpu.memory_space<vmem>>, %arg8: memref<8x16xbf16, #tpu.memory_space<vmem>>, %arg9: memref<8x16xbf16, #tpu.memory_space<vmem>>, %arg10: memref<8x8xbf16, #tpu.memory_space<vmem>>, %arg11: memref<8x8xbf16, #tpu.memory_space<vmem>>, %arg12: memref<8x1xf32, #tpu.memory_space<vmem>>, %arg13: memref<8x1xf32, #tpu.memory_space<vmem>>, %arg14: memref<1x8x512xbf16, #tpu.memory_space<vmem>>, %arg15: memref<1x8x512xbf16, #tpu.memory_space<vmem>>) attributes {dimension_semantics = [#tpu.dimension_semantics<parallel>, #tpu.dimension_semantics<parallel>], iteration_bounds = array<i64: 2, 2>, scalar_prefetch = 0 : i64, scratch_operands = 0 : i64, tpu.core_type = #tpu.core_type<tc>, window_params = [{transform_indices = @transform_0, window_bounds = array<i64: 1, 8, 512>}, {transform_indices = @transform_1, window_bounds = array<i64: 1, 16, 512>}, {transform_indices = @transform_2, window_bounds = array<i64: 1, 8, 1>}, {transform_indices = @transform_3, window_bounds = array<i64: 1, 8, 1>}, {pipeline_mode = #tpu.pipeline_mode<synchronous>, transform_indices = @transform_4, window_bounds = array<i64: 8, 8>}, {pipeline_mode = #tpu.pipeline_mode<synchronous>, transform_indices = @transform_5, window_bounds = array<i64: 8, 8>}, {pipeline_mode = #tpu.pipeline_mode<synchronous>, transform_indices = @transform_6, window_bounds = array<i64: 8, 16>}, {pipeline_mode = #tpu.pipeline_mode<synchronous>, transform_indices = @transform_7, window_bounds = array<i64: 8, 16>}, {pipeline_mode = #tpu.pipeline_mode<synchronous>, transform_indices = @transform_8, window_bounds = array<i64: 8, 8>}, {pipeline_mode = #tpu.pipeline_mode<synchronous>, transform_indices = @transform_9, window_bounds = array<i64: 8, 8>}, {pipeline_mode = #tpu.pipeline_mode<synchronous>, transform_indices = @transform_10, window_bounds = array<i64: 8, 1>}, {pipeline_mode = #tpu.pipeline_mode<synchronous>, transform_indices = @transform_11, window_bounds = array<i64: 8, 1>}, {transform_indices = @transform_12, window_bounds = array<i64: 1, 8, 512>}, {transform_indices = @transform_13, window_bounds = array<i64: 1, 8, 512>}]} {
    %c0 = arith.constant 0 : index
    %c0_0 = arith.constant 0 : index
    %c0_1 = arith.constant 0 : index
    %0 = vector.load %arg2[%c0, %c0_0, %c0_1] : memref<1x8x512xbf16, #tpu.memory_space<vmem>>, vector<1x8x512xbf16>
    %1 = vector.shape_cast %0 : vector<1x8x512xbf16> to vector<8x512xbf16>
    %c0_2 = arith.constant 0 : index
    %c0_3 = arith.constant 0 : index
    %c0_4 = arith.constant 0 : index
    %2 = vector.load %arg3[%c0_2, %c0_3, %c0_4] : memref<1x16x512xbf16, #tpu.memory_space<vmem>>, vector<1x16x512xbf16>
    %3 = vector.shape_cast %2 : vector<1x16x512xbf16> to vector<16x512xbf16>
    %c0_5 = arith.constant 0 : index
    %c0_6 = arith.constant 0 : index
    %4 = vector.load %arg6[%c0_5, %c0_6] : memref<8x8xbf16, #tpu.memory_space<vmem>>, vector<8x8xbf16>
    %cst = arith.constant dense<0.000000e+00> : vector<8x512xf32>
    %5 = tpu.matmul %4, %1, %cst {dimension_numbers = #tpu.dot_dimension_numbers<[1], [0], [0], [1], [0, 0, 1, 1], [], []>} : vector<8x8xbf16>, vector<8x512xbf16>, vector<8x512xf32> -> vector<8x512xf32>
    %c0_7 = arith.constant 0 : index
    %c0_8 = arith.constant 0 : index
    %6 = vector.load %arg8[%c0_7, %c0_8] : memref<8x16xbf16, #tpu.memory_space<vmem>>, vector<8x16xbf16>
    %cst_9 = arith.constant dense<0.000000e+00> : vector<8x512xf32>
    %7 = tpu.matmul %6, %3, %cst_9 {dimension_numbers = #tpu.dot_dimension_numbers<[1], [0], [0], [1], [0, 0, 1, 1], [], []>} : vector<8x16xbf16>, vector<16x512xbf16>, vector<8x512xf32> -> vector<8x512xf32>
    %8 = arith.addf %5, %7 : vector<8x512xf32>
    %c0_10 = arith.constant 0 : index
    %c0_11 = arith.constant 0 : index
    %c0_12 = arith.constant 0 : index
    %9 = vector.load %arg4[%c0_10, %c0_11, %c0_12] : memref<1x8x1xf32, #tpu.memory_space<vmem>>, vector<1x8x1xf32>
    %10 = vector.shape_cast %9 : vector<1x8x1xf32> to vector<8x1xf32>
    %11 = vector.broadcast %10 : vector<8x1xf32> to vector<8x512xf32>
    %12 = arith.addf %8, %11 : vector<8x512xf32>
    %c0_13 = arith.constant 0 : index
    %c0_14 = arith.constant 0 : index
    %13 = vector.load %arg7[%c0_13, %c0_14] : memref<8x8xbf16, #tpu.memory_space<vmem>>, vector<8x8xbf16>
    %cst_15 = arith.constant dense<0.000000e+00> : vector<8x512xf32>
    %14 = tpu.matmul %13, %1, %cst_15 {dimension_numbers = #tpu.dot_dimension_numbers<[1], [0], [0], [1], [0, 0, 1, 1], [], []>} : vector<8x8xbf16>, vector<8x512xbf16>, vector<8x512xf32> -> vector<8x512xf32>
    %c0_16 = arith.constant 0 : index
    %c0_17 = arith.constant 0 : index
    %15 = vector.load %arg9[%c0_16, %c0_17] : memref<8x16xbf16, #tpu.memory_space<vmem>>, vector<8x16xbf16>
    %cst_18 = arith.constant dense<0.000000e+00> : vector<8x512xf32>
    %16 = tpu.matmul %15, %3, %cst_18 {dimension_numbers = #tpu.dot_dimension_numbers<[1], [0], [0], [1], [0, 0, 1, 1], [], []>} : vector<8x16xbf16>, vector<16x512xbf16>, vector<8x512xf32> -> vector<8x512xf32>
    %17 = arith.addf %14, %16 : vector<8x512xf32>
    %c0_19 = arith.constant 0 : index
    %c0_20 = arith.constant 0 : index
    %c0_21 = arith.constant 0 : index
    %18 = vector.load %arg5[%c0_19, %c0_20, %c0_21] : memref<1x8x1xf32, #tpu.memory_space<vmem>>, vector<1x8x1xf32>
    %19 = vector.shape_cast %18 : vector<1x8x1xf32> to vector<8x1xf32>
    %20 = vector.broadcast %19 : vector<8x1xf32> to vector<8x512xf32>
    %21 = arith.addf %17, %20 : vector<8x512xf32>
    %22 = arith.negf %12 : vector<8x512xf32>
    %23 = math.exp %22 : vector<8x512xf32>
    %cst_22 = arith.constant 1.000000e+00 : f32
    %24 = vector.broadcast %cst_22 : f32 to vector<8x512xf32>
    %25 = arith.addf %24, %23 : vector<8x512xf32>
    %26 = arith.divf %24, %25 : vector<8x512xf32>
    %27 = math.tanh %21 : vector<8x512xf32>
    %28 = arith.mulf %26, %27 : vector<8x512xf32>
    %29 = arith.truncf %28 : vector<8x512xf32> to vector<8x512xbf16>
    %c0_23 = arith.constant 0 : index
    %c0_24 = arith.constant 0 : index
    %30 = vector.load %arg10[%c0_23, %c0_24] : memref<8x8xbf16, #tpu.memory_space<vmem>>, vector<8x8xbf16>
    %cst_25 = arith.constant dense<0.000000e+00> : vector<8x512xf32>
    %31 = tpu.matmul %30, %29, %cst_25 {dimension_numbers = #tpu.dot_dimension_numbers<[1], [0], [0], [1], [0, 0, 1, 1], [], []>} : vector<8x8xbf16>, vector<8x512xbf16>, vector<8x512xf32> -> vector<8x512xf32>
    %c0_26 = arith.constant 0 : index
    %c0_27 = arith.constant 0 : index
    %32 = vector.load %arg12[%c0_26, %c0_27] : memref<8x1xf32, #tpu.memory_space<vmem>>, vector<8x1xf32>
    %33 = vector.broadcast %32 : vector<8x1xf32> to vector<8x512xf32>
    %34 = arith.addf %31, %33 : vector<8x512xf32>
    %c0_28 = arith.constant 0 : index
    %c0_29 = arith.constant 0 : index
    %35 = vector.load %arg11[%c0_28, %c0_29] : memref<8x8xbf16, #tpu.memory_space<vmem>>, vector<8x8xbf16>
    %cst_30 = arith.constant dense<0.000000e+00> : vector<8x512xf32>
    %36 = tpu.matmul %35, %29, %cst_30 {dimension_numbers = #tpu.dot_dimension_numbers<[1], [0], [0], [1], [0, 0, 1, 1], [], []>} : vector<8x8xbf16>, vector<8x512xbf16>, vector<8x512xf32> -> vector<8x512xf32>
    %c0_31 = arith.constant 0 : index
    %c0_32 = arith.constant 0 : index
    %37 = vector.load %arg13[%c0_31, %c0_32] : memref<8x1xf32, #tpu.memory_space<vmem>>, vector<8x1xf32>
    %38 = vector.broadcast %37 : vector<8x1xf32> to vector<8x512xf32>
    %39 = arith.addf %36, %38 : vector<8x512xf32>
    %40 = arith.extf %1 : vector<8x512xbf16> to vector<8x512xf32>
    %41 = arith.addf %40, %34 : vector<8x512xf32>
    %cst_33 = arith.constant 0.707106769 : f32
    %42 = vector.broadcast %cst_33 : f32 to vector<8x512xf32>
    %43 = arith.mulf %41, %42 : vector<8x512xf32>
    %44 = arith.truncf %43 : vector<8x512xf32> to vector<8x512xbf16>
    %c0_34 = arith.constant 0 : index
    %c0_35 = arith.constant 0 : index
    %c0_36 = arith.constant 0 : index
    %45 = vector.load %arg14[%c0_34, %c0_35, %c0_36] : memref<1x8x512xbf16, #tpu.memory_space<vmem>>, vector<1x8x512xbf16>
    %46 = vector.shape_cast %45 : vector<1x8x512xbf16> to vector<8x512xbf16>
    %47 = vector.shape_cast %44 : vector<8x512xbf16> to vector<1x8x512xbf16>
    tpu.vector_store %arg14[%c0_34, %c0_35, %c0_36], %47 {strides = array<i32>} : memref<1x8x512xbf16, #tpu.memory_space<vmem>>, vector<1x8x512xbf16>,
    %48 = arith.truncf %39 : vector<8x512xf32> to vector<8x512xbf16>
    %c0_37 = arith.constant 0 : index
    %c0_38 = arith.constant 0 : index
    %c0_39 = arith.constant 0 : index
    %49 = vector.load %arg15[%c0_37, %c0_38, %c0_39] : memref<1x8x512xbf16, #tpu.memory_space<vmem>>, vector<1x8x512xbf16>
    %50 = vector.shape_cast %49 : vector<1x8x512xbf16> to vector<8x512xbf16>
    %51 = vector.shape_cast %48 : vector<8x512xbf16> to vector<1x8x512xbf16>
    tpu.vector_store %arg15[%c0_37, %c0_38, %c0_39], %51 {strides = array<i32>} : memref<1x8x512xbf16, #tpu.memory_space<vmem>>, vector<1x8x512xbf16>,
    return
  }
  func.func @transform_0(%arg0: i32, %arg1: i32) -> (i32, i32, i32) {
    %c0_i32 = arith.constant 0 : i32
    %c0_i32_0 = arith.constant 0 : i32
    return %arg0, %c0_i32, %arg1 : i32, i32, i32
  }
  func.func @transform_1(%arg0: i32, %arg1: i32) -> (i32, i32, i32) {
    %c0_i32 = arith.constant 0 : i32
    %c0_i32_0 = arith.constant 0 : i32
    return %arg0, %c0_i32, %arg1 : i32, i32, i32
  }
  func.func @transform_2(%arg0: i32, %arg1: i32) -> (i32, i32, i32) {
    %c0_i32 = arith.constant 0 : i32
    %c0_i32_0 = arith.constant 0 : i32
    %c0_i32_1 = arith.constant 0 : i32
    return %arg0, %c0_i32, %c0_i32_0 : i32, i32, i32
  }
  func.func @transform_3(%arg0: i32, %arg1: i32) -> (i32, i32, i32) {
    %c0_i32 = arith.constant 0 : i32
    %c0_i32_0 = arith.constant 0 : i32
    %c0_i32_1 = arith.constant 0 : i32
    return %arg0, %c0_i32, %c0_i32_0 : i32, i32, i32
  }
  func.func @transform_4(%arg0: i32, %arg1: i32) -> (i32, i32) {
    %c0_i32 = arith.constant 0 : i32
    %c0_i32_0 = arith.constant 0 : i32
    %c0_i32_1 = arith.constant 0 : i32
    return %c0_i32, %c0_i32_0 : i32, i32
  }
  func.func @transform_5(%arg0: i32, %arg1: i32) -> (i32, i32) {
    %c0_i32 = arith.constant 0 : i32
    %c0_i32_0 = arith.constant 0 : i32
    %c0_i32_1 = arith.constant 0 : i32
    return %c0_i32, %c0_i32_0 : i32, i32
  }
  func.func @transform_6(%arg0: i32, %arg1: i32) -> (i32, i32) {
    %c0_i32 = arith.constant 0 : i32
    %c0_i32_0 = arith.constant 0 : i32
    %c0_i32_1 = arith.constant 0 : i32
    return %c0_i32, %c0_i32_0 : i32, i32
  }
  func.func @transform_7(%arg0: i32, %arg1: i32) -> (i32, i32) {
    %c0_i32 = arith.constant 0 : i32
    %c0_i32_0 = arith.constant 0 : i32
    %c0_i32_1 = arith.constant 0 : i32
    return %c0_i32, %c0_i32_0 : i32, i32
  }
  func.func @transform_8(%arg0: i32, %arg1: i32) -> (i32, i32) {
    %c0_i32 = arith.constant 0 : i32
    %c0_i32_0 = arith.constant 0 : i32
    %c0_i32_1 = arith.constant 0 : i32
    return %c0_i32, %c0_i32_0 : i32, i32
  }
  func.func @transform_9(%arg0: i32, %arg1: i32) -> (i32, i32) {
    %c0_i32 = arith.constant 0 : i32
    %c0_i32_0 = arith.constant 0 : i32
    %c0_i32_1 = arith.constant 0 : i32
    return %c0_i32, %c0_i32_0 : i32, i32
  }
  func.func @transform_10(%arg0: i32, %arg1: i32) -> (i32, i32) {
    %c0_i32 = arith.constant 0 : i32
    %c0_i32_0 = arith.constant 0 : i32
    %c0_i32_1 = arith.constant 0 : i32
    return %c0_i32, %c0_i32_0 : i32, i32
  }
  func.func @transform_11(%arg0: i32, %arg1: i32) -> (i32, i32) {
    %c0_i32 = arith.constant 0 : i32
    %c0_i32_0 = arith.constant 0 : i32
    %c0_i32_1 = arith.constant 0 : i32
    return %c0_i32, %c0_i32_0 : i32, i32
  }
  func.func @transform_12(%arg0: i32, %arg1: i32) -> (i32, i32, i32) {
    %c0_i32 = arith.constant 0 : i32
    %c0_i32_0 = arith.constant 0 : i32
    return %arg0, %c0_i32, %arg1 : i32, i32, i32
  }
  func.func @transform_13(%arg0: i32, %arg1: i32) -> (i32, i32, i32) {
    %c0_i32 = arith.constant 0 : i32
    %c0_i32_0 = arith.constant 0 : i32
    return %arg0, %c0_i32, %arg1 : i32, i32, i32
  }
}

</mosaic_0001>

<bundles_post_ra>
// kernel: ema_residual_block_forward.1
= control target key start
LH: loop header
LB: loop body
LE: loop exit
PB: predicated region body
PF: predicated region fallthrough
CT: control target
= control target key end

     0   :  { %s1938_s0 = inlined_call_operand.vmem [shape: bf16[2,8,1024], index: 0, kind: input, shape index: {}]   ;;  %s1939_s1 = inlined_call_operand.vmem [shape: bf16[2,16,1024], index: 1, kind: input, shape index: {}]   ;;  %s1940_s2 = inlined_call_operand.vmem [shape: f32[2,8,1], index: 2, kind: input, shape index: {}]   ;;  %s1941_s3 = inlined_call_operand.vmem [shape: f32[2,8,1], index: 3, kind: input, shape index: {}]   ;;  %s1942_s4 = inlined_call_operand.vmem [shape: bf16[8,8], index: 4, kind: input, shape index: {}]   ;;  %s1943_s5 = inlined_call_operand.vmem [shape: bf16[8,8], index: 5, kind: input, shape index: {}]   ;;  %s1944_s6 = inlined_call_operand.vmem [shape: bf16[8,16], index: 6, kind: input, shape index: {}]   ;;  %s1945_s7 = inlined_call_operand.vmem [shape: bf16[8,16], index: 7, kind: input, shape index: {}]   ;;  %s1946_s8 = inlined_call_operand.vmem [shape: bf16[8,8], index: 8, kind: input, shape index: {}]   ;;  %s1947_s9 = inlined_call_operand.vmem [shape: bf16[8,8], index: 9, kind: input, shape index: {}]   ;;  %s1948_s10 = inlined_call_operand.vmem [shape: f32[8,1], index: 10, kind: input, shape index: {}]   ;;  %s1949_s11 = inlined_call_operand.vmem [shape: f32[8,1], index: 11, kind: input, shape index: {}]   ;;  %s1950_s12 = inlined_call_operand.vmem [shape: bf16[2,8,1024], index: 12, kind: output, shape index: {0}]   ;;  %s1951_s13 = inlined_call_operand.vmem [shape: bf16[2,8,1024], index: 13, kind: output, shape index: {1}]  }
   0x1   :  { %1954 = sst [smem:[#allocation5_spill]] %s1947_s9 }
   0x2   :  { %1955 = sst [smem:[#allocation6_spill]] %s1950_s12 }
   0x3   :  { %1956 = sst [smem:[#allocation7_spill]] %s1951_s13 }
   0x4   :  { %s1753_s25 = smov 0   ;;  %s1755_s26 = smov 0  }
   0x5   :  { %s1757_s27 = smov 0   ;;  %s1759_s28 = smov 0  }
   0x6   :  { %s1761_s29 = smov 0   ;;  %s1763_s30 = smov 0  }
   0x7   :  { %s1765_s14 = smov 0  }
   0x8 LB: > { %s33_s15 = sadd.s32 1, %s1672_s29  ;;  %s36_s16 = sadd.s32 1, %s1676_s30  ;;  %s1680_s14 = sphi %s1765_s14, %s24_s14   ;;  %s1676_s30 = sphi %s1763_s30, %s1969_s30   ;;  %s1672_s29 = sphi %s1761_s29, %s1968_s29   ;;  %s1668_s28 = sphi %s1759_s28, %s1967_s28   ;;  %s1664_s27 = sphi %s1757_s27, %s1966_s27   ;;  %s1660_s26 = sphi %s1755_s26, %s1965_s26   ;;  %s1656_s25 = sphi %s1753_s25, %s1964_s25  }
   0x9   : > { %p34_p0 = scmp.ge.s32.totalorder %s33_s15, 2  ;;  %p80_p1 = scmp.ne.s32.totalorder %s1660_s26, %s1656_s25 }
   0xa   : > { %p81_p2 = scmp.eq.s32.totalorder %s1680_s14, 0  ;;  %s73_s20 = sadd.s32 1, %s1660_s26 }
   0xb   : > { %s1971_s15 = smov (%p34_p0, %s33_s15), 0  ;;  %s1973_s16 = smov (!%p34_p0, %s36_s16), %s1676_s30 }
   0xc   : > { %1957 = sst [smem:[#allocation3_spill]] %s1971_s15  ;;  %p82_p3 = por %p81_p2, %p80_p1 }
   0xd   : > { %p38_p4 = scmp.ge.s32.totalorder %s1973_s16, 2  ;;  %s69_s17 = ssub.s32 %s1672_s29, %s1971_s15 }
   0xe   : > { %p1473_p6 = scmp.ge.s32.totalorder %s1680_s14, 4 }
   0xf   : > { %s1975_s16 = smov (%p38_p4, %s1973_s16), 0 }
  0x10   : > { %1958 = sst [smem:[#allocation4_spill]] %s1975_s16  ;;  %s68_s18 = ssub.s32 %s1676_s30, %s1975_s16 }
  0x11   : > { %s70_s19 = sor.u32 %s69_s17, %s68_s18  ;;  %406 = sbr.rel (%p1473_p6) target bundleno = 33 (0x21), region = 48 }
  0x12   : > { %p71_p5 = scmp.eq.s32.totalorder %s70_s19, 0 }
  0x14   : > { %s1804_s21 = scalar_select %p71_p5, %s1660_s26, %s73_s20  }
  0x18   : > { %422 = sbr.rel (!%p82_p3) target bundleno = 33 (0x21), region = 56  ;;  %s424_s22 = sand.u32 (%p82_p3), 1, %s1660_s26  }
  0x19   : > { %s1475_s23 = sshll.u32 (%p82_p3), %s1672_s29, 2  ;;  %s1474_s24 = sshll.u32 (%p82_p3), %s424_s22, 5 }
  0x1a   : > { %s1476_s15 = sshll.u32 (%p82_p3), %s1676_s30, 4  ;;  %s426_s18 = scalar_lea.vmem (%p82_p3), [#allocation2], %s1474_s24 }
  0x1b   : > { %s429_s13 = sadd.s32 (%p82_p3), %s1476_s15, %s1475_s23 }
  0x1c   : > { %s1477_s12 = sshll.u32 (%p82_p3), %s429_s13, 2 }
  0x1d   : > { %s431_s17 = scalar_lea.vmem (%p82_p3), %s1939_s1, %s1477_s12 }
  0x1e   : > { %v444_v0 = vld [vmem:[%s431_s17] sm:$0xff] (%p82_p3)  ;;  %v446_v1 = vld [vmem:[%s431_s17 + $0x8] sm:$0xff] (%p82_p3) }
  0x1f   : > { %v448_v2 = vld [vmem:[%s431_s17 + $0x20] sm:$0xff]  ;;  %445 = vst [vmem:[%s426_s18] sm:$0xff] %v444_v0  ;;  %447 = vst [vmem:[%s426_s18 + $0x8] sm:$0xff] %v446_v1  ;;  %v450_v3 = vld [vmem:[%s431_s17 + $0x28] sm:$0xff] }
  0x20   : > { %449 = vst [vmem:[%s426_s18 + $0x10] sm:$0xff] %v448_v2  ;;  %451 = vst [vmem:[%s426_s18 + $0x18] sm:$0xff] %v450_v3 }
  0x21 PF: > { %p1478_p7 = scmp.ge.s32.totalorder %s1680_s14, 1  ;;  %p470_p8 = scmp.lt.s32.totalorder %s1680_s14, 5 }
  0x23   : > { %p471_p9 = pnand %p1478_p7, %p470_p8 }
  0x24   : > { %s477_s9 = sand.u32 (!%p471_p9), 1, %s1656_s25   ;;  %s1480_s12 = sshll.u32 (!%p471_p9), %s1664_s27, 2  ;;  %v1682_v4 = vmov (!%p471_p9), 0   ;;  %v597_v9 = vld [vmem:[%s1944_s6] sm:$0xf] (!%p471_p9)  ;;  %vm618_vm0 = vcmask (!%p471_p9), 130048  }
  0x25   : > { %474 = sbr.rel (%p471_p9) target bundleno = 541 (0x21d), region = 87  ;;  %s1479_s13 = sshll.u32 (!%p471_p9), %s477_s9, 5  ;;  %654 = vmatprep.mubr.bf16.mxu0 (!%p471_p9), %v1682_v4  ;;  %695 = vmatprep.mubr.bf16.mxu1 (!%p471_p9), %v1682_v4  ;;  %vm718_vm1 = vcmask (!%p471_p9), 1043456   ;;  %v596_v20 = vld [vmem:[%s1942_s4] sm:$0xf] (!%p471_p9)  ;;  %vm714_vm2 = vcmask (!%p471_p9), 64512  }
  0x26   : > { %p551_p10 = scmp.lt.s32.totalorder (!%p471_p9), %s1668_s28, 1  ;;  %p553_p11 = scmp.lt.s32.totalorder (!%p471_p9), %s1480_s12, 7  ;;  %1590 = vset.pattern.permute.xlu0 (!%p471_p9), %v1682_v4  ;;  %1591 = vset.pattern.permute.xlu1 (!%p471_p9), %v1682_v4  ;;  %v824_v21 = vld [vmem:[%s1945_s7] sm:$0xf] (!%p471_p9) }
  0x27   : > { %s479_s15 = scalar_lea.vmem (!%p471_p9), [#allocation2], %s1479_s13  ;;  %v823_v22 = vld [vmem:[%s1943_s5] sm:$0xf] (!%p471_p9)  ;;  %s1960_s16 = sld [smem:[#allocation6_spill]] (!%p471_p9) }
  0x28   : > { %v1592_v5 = vld [vmem:[%s479_s15 + $0x4] ss:$16 sps:$4 sm:$0xff] (!%p471_p9)   ;;  %v1594_v6 = vld [vmem:[%s479_s15 + $0xc] ss:$16 sps:$4 sm:$0xff] (!%p471_p9)   ;;  %v1596_v7 = vld [vmem:[%s479_s15] ss:$16 sps:$4 sm:$0xff] (!%p471_p9)  }
  0x29   : > { %622 = vmatprep.subr.bf16.mxu0 (!%p471_p9), %v1592_v5  ;;  %v1597_v8 = vld [vmem:[%s479_s15 + $0x8] ss:$16 sps:$4 sm:$0xff] (!%p471_p9)   ;;  %663 = vmatprep.subr.bf16.mxu1 (!%p471_p9), %v1594_v6  ;;  %v1042_v23 = vld [vmem:[%s1948_s10] sm:$0xff] (!%p471_p9)  ;;  %s1959_s15 = sld [smem:[#allocation5_spill]] (!%p471_p9)  ;;  %s1961_s23 = sld [smem:[#allocation7_spill]] (!%p471_p9) }
  0x2a   : > { %623 = vmatpush1.bf16.msra.mxu0 (!%p471_p9), %v1596_v7  ;;  %664 = vmatpush1.bf16.msra.mxu1 (!%p471_p9), %v1597_v8  ;;  %v1146_v24 = vld [vmem:[%s1949_s11] sm:$0xff] (!%p471_p9) }
  0x2b   : > { %1045 = vperm.xlu1 (!%p471_p9), %1591, %v1042_v23  }
  0x2c   : > { %s1977_s28 = smov (!%p551_p10, %s1668_s28), 1  ;;  %s1979_s12 = smov (!%p553_p11, %s1480_s12), 7 }
  0x2d   : > { %s1481_s25 = sshll.u32 %s1977_s28, 3  ;;  %1495 = vmatmul.mubr.msk.bf16.vlgmr.msra.gmra.mrb[0].mxu0 %vm618_vm0, %v597_v9  ;;  %1496 = vmatmul.mubr.msk.bf16.vlgmr.msra.gmra.mrb[0].mxu1 %vm618_vm0, %v597_v9 }
  0x2e   : > { %s556_s27 = sadd.s32 %s1481_s25, %s1979_s12  ;;  %s564_s20 = scalar_lea.vmem %s1940_s2, %s1481_s25  ;;  %763 = vmatprep.mubr.bf16.mxu0 %v1682_v4  ;;  %804 = vmatprep.mubr.bf16.mxu1 %v1682_v4 }
  0x2f   : > { %s1829_s24 = sshll.u32 %s556_s27, 2  ;;  %v813_v10 = vld [vmem:[%s564_s20] sm:$0xff]  ;;  %s568_s28 = scalar_lea.vmem %s1941_s3, %s1481_s25  ;;  %1149 = vperm.xlu1 %1591, %v1146_v24  }
  0x30   : > { %s558_s13 = scalar_lea.vmem %s1938_s0, %s1829_s24  ;;  %816 = vperm.xlu0 %1590, %v813_v10   ;;  %v995_v16 = vld [vmem:[%s568_s28] sm:$0xff]  ;;  %s577_s19 = scalar_lea.vmem %s1960_s16, %s1829_s24 }
  0x31   : > { %v1838_v11 = vld [vmem:[%s558_s13] sm:$0xff]  ;;  %v1840_v12 = vld [vmem:[%s558_s13 + $0x8] sm:$0xff]  ;;  %s587_s17 = scalar_lea.vmem %s1961_s23, %s1829_s24 }
  0x32   : > { %v1498_v13 = vcombine.high %v1838_v11, %v1838_v11  ;;  %v1500_v14 = vcombine.high %v1840_v12, %v1840_v12  ;;  %v1497_v15 = vcombine.low %v1838_v11, %v1838_v11  ;;  %v1499_v17 = vcombine.low %v1840_v12, %v1840_v12 }
  0x34   : > { %1501 = vmatprep.subr.msk.bf16.mxu0 %vm718_vm1, %v1498_v13  ;;  %1503 = vmatprep.subr.msk.bf16.mxu1 %vm718_vm1, %v1500_v14  ;;  %v720_v18 = vsel %vm718_vm1, %v1497_v15, 0  ;;  %v726_v19 = vsel %vm718_vm1, %v1499_v17, 0 }
  0x35   : > { %732 = vmatpush1.bf16.msra.mxu0 %v720_v18  ;;  %998 = vperm.xlu0 %1590, %v995_v16  }
  0x36   : > { %773 = vmatpush1.bf16.msra.mxu1 %v726_v19  ;;  %828 = vmatprep.subr.bf16.mxu0 %v1592_v5 }
  0x37   : > { %869 = vmatprep.subr.bf16.mxu1 %v1594_v6 }
  0x38   : > { %1502 = vmatmul.mubr.msk.bf16.vlgmr.msra.gmra.mrb[4].mxu0 %vm714_vm2, %v596_v20 }
  0x39   : > { %1504 = vmatmul.mubr.msk.bf16.vlgmr.msra.gmra.mrb[4].mxu1 %vm714_vm2, %v596_v20  ;;  %829 = vmatpush1.bf16.msra.mxu0 %v1596_v7 }
  0x3a   : > { %870 = vmatpush1.bf16.msra.mxu1 %v1597_v8  ;;  %860 = vmatprep.mubr.bf16.mxu0 %v1682_v4 }
  0x3b   : > { %901 = vmatprep.mubr.bf16.mxu1 %v1682_v4  ;;  %1507 = vmatprep.subr.msk.bf16.mxu0 %vm718_vm1, %v1498_v13 }
  0x3c   : > { %1509 = vmatprep.subr.msk.bf16.mxu1 %vm718_vm1, %v1500_v14 }
  0x40   : > { %1505 = vmatmul.mubr.msk.bf16.vlgmr.msra.gmra.mrb[8].mxu0 %vm618_vm0, %v824_v21 }
  0x41   : > { %1506 = vmatmul.mubr.msk.bf16.vlgmr.msra.gmra.mrb[8].mxu1 %vm618_vm0, %v824_v21  ;;  %914 = vmatpush1.bf16.msra.mxu0 %v720_v18 }
  0x42   : > { %955 = vmatpush1.bf16.msra.mxu1 %v726_v19  ;;  %945 = vmatprep.mubr.bf16.mxu0 %v1682_v4 }
  0x43   : > { %986 = vmatprep.mubr.bf16.mxu1 %v1682_v4 }
  0x48   : > { %1508 = vmatmul.mubr.msk.bf16.vlgmr.msra.gmra.mrb[12].mxu0 %vm714_vm2, %v823_v22 }
  0x49   : > { %1510 = vmatmul.mubr.msk.bf16.vlgmr.msra.gmra.mrb[12].mxu1 %vm714_vm2, %v823_v22  ;;  %1095 = vmatprep.mubr.bf16.mxu0 %v1682_v4 }
  0x4a   : > { %1136 = vmatprep.mubr.bf16.mxu1 %v1682_v4 }
  0xaf   : > { %v817_v33 = vpop.permute.xlu0 %816 }
  0xb4   : > { %v999_v62 = vpop.permute.xlu0 %998 }
 0x100   : > { %v656_v25 = vpop.f32.mrb[0].mxu0  ;;  %v697_v26 = vpop.f32.mrb[0].mxu1 }
 0x101   : > { %v658_v27 = vpop.f32.mrb[1].mxu0  ;;  %v699_v28 = vpop.f32.mrb[1].mxu1 }
 0x102   : > { %v660_v29 = vpop.f32.mrb[2].mxu0  ;;  %v701_v30 = vpop.f32.mrb[2].mxu1 }
 0x103   : > { %v661_v31 = vpop.f32.mrb[3].mxu0  ;;  %v702_v32 = vpop.f32.mrb[3].mxu1 }
 0x10b   : > { %v765_v34 = vpop.f32.mrb[4].mxu0 }
 0x10c   : > { %v806_v35 = vpop.f32.mrb[4].mxu1  ;;  %v766_v36 = vadd.f32 %v765_v34, %v656_v25  ;;  %v767_v38 = vpop.f32.mrb[5].mxu0 }
 0x10d   : > { %v807_v37 = vadd.f32 %v806_v35, %v697_v26  ;;  %v808_v39 = vpop.f32.mrb[5].mxu1  ;;  %v768_v40 = vadd.f32 %v767_v38, %v658_v27  ;;  %v769_v42 = vpop.f32.mrb[6].mxu0 }
 0x10e   : > { %v809_v41 = vadd.f32 %v808_v39, %v699_v28  ;;  %v810_v43 = vpop.f32.mrb[6].mxu1  ;;  %v819_v44 = vadd.f32 %v817_v33, %v766_v36  ;;  %v770_v46 = vpop.f32.mrb[7].mxu0 }
 0x10f   : > { %v821_v45 = vadd.f32 %v817_v33, %v807_v37  ;;  %v811_v47 = vpop.f32.mrb[7].mxu1  ;;  %v820_v48 = vadd.f32 %v817_v33, %v768_v40  ;;  %v1046_v46 = vpop.permute.xlu1 %1045 }
 0x110   : > { %v822_v49 = vadd.f32 %v817_v33, %v809_v41  ;;  %v1511_v50 = vmul.f32 -1.442695, %v819_v44  ;;  %v1041_v44 = vld [vmem:[%s1946_s8] sm:$0xf]  ;;  %v1237_v47 = vunpack.c.l.bf16 %v1838_v11 }
 0x111   : > { %v1513_v51 = vmul.f32 -1.442695, %v821_v45  ;;  %v1512_v52 = vmul.f32 -1.442695, %v820_v48  ;;  %v1145_v45 = vld [vmem:[%s1959_s15] sm:$0xf] }
 0x112   : > { %v1514_v53 = vmul.f32 -1.442695, %v822_v49  ;;  %1602 = vpow2.f32 %v1511_v50  ;;  %v1238_v49 = vunpack.c.h.bf16 %v1838_v11  ;;  %v1239_v50 = vunpack.c.l.bf16 %v1840_v12 }
 0x113   : > { %1604 = vpow2.f32 %v1513_v51  ;;  %v862_v54 = vpop.f32.mrb[8].mxu0 }
 0x114   : > { %v903_v55 = vpop.f32.mrb[8].mxu1  ;;  %1606 = vpow2.f32 %v1512_v52  ;;  %v864_v56 = vpop.f32.mrb[9].mxu0 }
 0x115   : > { %v905_v57 = vpop.f32.mrb[9].mxu1  ;;  %1608 = vpow2.f32 %v1514_v53  ;;  %v866_v58 = vpop.f32.mrb[10].mxu0 }
 0x116   : > { %v907_v59 = vpop.f32.mrb[10].mxu1  ;;  %v867_v60 = vpop.f32.mrb[11].mxu0 }
 0x117   : > { %v908_v61 = vpop.f32.mrb[11].mxu1 }
 0x11b   : > { %v947_v63 = vpop.f32.mrb[12].mxu0 }
 0x11c   : > { %v988_v0 = vpop.f32.mrb[12].mxu1  ;;  %v1603_v1 = vpop.eup %1602  ;;  %v948_v2 = vadd.f32 %v947_v63, %v862_v54 }
 0x11d   : > { %v989_v3 = vadd.f32 %v988_v0, %v903_v55  ;;  %v949_v5 = vpop.f32.mrb[13].mxu0  ;;  %v990_v6 = vpop.f32.mrb[13].mxu1  ;;  %v1017_v8 = vadd.f32 1.0, %v1603_v1 }
 0x11e   : > { %v1605_v7 = vpop.eup %1604  ;;  %v950_v9 = vadd.f32 %v949_v5, %v864_v56  ;;  %v991_v10 = vadd.f32 %v990_v6, %v905_v57  ;;  %v951_v13 = vpop.f32.mrb[14].mxu0  ;;  %v1001_v21 = vadd.f32 %v999_v62, %v948_v2 }
 0x11f   : > { %v992_v14 = vpop.f32.mrb[14].mxu1  ;;  %v1607_v15 = vpop.eup %1606  ;;  %v1019_v16 = vadd.f32 1.0, %v1605_v7  ;;  %1610 = vrcp.f32 %v1017_v8  ;;  %v1003_v23 = vadd.f32 %v999_v62, %v989_v3 }
 0x120   : > { %v952_v17 = vpop.f32.mrb[15].mxu0  ;;  %v993_v18 = vpop.f32.mrb[15].mxu1  ;;  %v1018_v20 = vadd.f32 1.0, %v1607_v15  ;;  %v1002_v24 = vadd.f32 %v999_v62, %v950_v9  ;;  %v1004_v25 = vadd.f32 %v999_v62, %v991_v10 }
 0x121   : > { %v1609_v19 = vpop.eup %1608  ;;  %1612 = vrcp.f32 %v1019_v16  ;;  %v1150_v7 = vpop.permute.xlu1 %1149 }
 0x122   : > { %v1020_v22 = vadd.f32 1.0, %v1609_v19  ;;  %1614 = vrcp.f32 %v1018_v20 }
 0x124   : > { %1616 = vrcp.f32 %v1020_v22 }
 0x125   : > { %1618 = vtanh.f32 %v1001_v21 }
 0x126   : > { %1620 = vtanh.f32 %v1003_v23 }
 0x127   : > { %1622 = vtanh.f32 %v1002_v24 }
 0x128   : > { %1624 = vtanh.f32 %v1004_v25 }
 0x129   : > { %v1611_v26 = vpop.eup %1610 }
 0x12b   : > { %v1613_v27 = vpop.eup %1612 }
 0x12c   : > { %v1615_v28 = vpop.eup %1614 }
 0x12e   : > { %v1617_v29 = vpop.eup %1616 }
 0x12f   : > { %v1619_v30 = vpop.eup %1618 }
 0x130   : > { %v1621_v31 = vpop.eup %1620  ;;  %v1033_v32 = vmul.f32 %v1619_v30, %v1611_v26 }
 0x131   : > { %v1623_v33 = vpop.eup %1622  ;;  %v1035_v34 = vmul.f32 %v1621_v31, %v1613_v27 }
 0x132   : > { %v1625_v35 = vpop.eup %1624  ;;  %v1034_v36 = vmul.f32 %v1623_v33, %v1615_v28  ;;  %v1037_v37 = vpack.c.bf16 %v1033_v32, %v1033_v32 }
 0x133   : > { %v1036_v38 = vmul.f32 %v1625_v35, %v1617_v29  ;;  %v1039_v39 = vpack.c.bf16 %v1035_v34, %v1035_v34 }
 0x134   : > { %v1038_v40 = vpack.c.bf16 %v1034_v36, %v1034_v36  ;;  %v1052_v41 = vsel %vm718_vm1, %v1037_v37, 0 }
 0x135   : > { %v1040_v42 = vpack.c.bf16 %v1036_v38, %v1036_v38  ;;  %v1058_v43 = vsel %vm718_vm1, %v1039_v39, 0 }
 0x136   : > { %1515 = vmatprep.subr.msk.bf16.mxu0 %vm718_vm1, %v1038_v40 }
 0x137   : > { %1517 = vmatprep.subr.msk.bf16.mxu1 %vm718_vm1, %v1040_v42  ;;  %1064 = vmatpush1.bf16.msra.mxu0 %v1052_v41 }
 0x138   : > { %1105 = vmatpush1.bf16.msra.mxu1 %v1058_v43  ;;  %1519 = vmatprep.subr.msk.bf16.mxu0 %vm718_vm1, %v1038_v40 }
 0x139   : > { %1521 = vmatprep.subr.msk.bf16.mxu1 %vm718_vm1, %v1040_v42 }
 0x13a   : > { %1516 = vmatmul.mubr.msk.bf16.vlgmr.msra.gmra.mrb[16].mxu0 %vm714_vm2, %v1041_v44 }
 0x13b   : > { %1518 = vmatmul.mubr.msk.bf16.vlgmr.msra.gmra.mrb[16].mxu1 %vm714_vm2, %v1041_v44  ;;  %1156 = vmatpush1.bf16.msra.mxu0 %v1052_v41 }
 0x13c   : > { %1197 = vmatpush1.bf16.msra.mxu1 %v1058_v43  ;;  %1187 = vmatprep.mubr.bf16.mxu0 %v1682_v4 }
 0x13d   : > { %1228 = vmatprep.mubr.bf16.mxu1 %v1682_v4  ;;  %v1240_v4 = vunpack.c.h.bf16 %v1840_v12 }
 0x142   : > { %1520 = vmatmul.mubr.msk.bf16.vlgmr.msra.gmra.mrb[20].mxu0 %vm714_vm2, %v1145_v45 }
 0x143   : > { %1522 = vmatmul.mubr.msk.bf16.vlgmr.msra.gmra.mrb[20].mxu1 %vm714_vm2, %v1145_v45 }
 0x20d   : > { %v1097_v48 = vpop.f32.mrb[16].mxu0 }
 0x20e   : > { %v1138_v51 = vpop.f32.mrb[16].mxu1  ;;  %v1099_v52 = vpop.f32.mrb[17].mxu0  ;;  %v1098_v53 = vadd.f32 %v1097_v48, %v1046_v46 }
 0x20f   : > { %v1140_v54 = vpop.f32.mrb[17].mxu1  ;;  %v1101_v55 = vpop.f32.mrb[18].mxu0  ;;  %v1100_v56 = vadd.f32 %v1099_v52, %v1046_v46  ;;  %v1139_v57 = vadd.f32 %v1138_v51, %v1046_v46 }
 0x210   : > { %v1142_v58 = vpop.f32.mrb[18].mxu1  ;;  %v1141_v59 = vadd.f32 %v1140_v54, %v1046_v46  ;;  %v1241_v60 = vadd.f32 %v1237_v47, %v1098_v53  ;;  %v1102_v61 = vpop.f32.mrb[19].mxu0 }
 0x211   : > { %v1242_v62 = vadd.f32 %v1238_v49, %v1100_v56  ;;  %v1243_v63 = vadd.f32 %v1239_v50, %v1139_v57  ;;  %v1143_v0 = vpop.f32.mrb[19].mxu1 }
 0x212   : > { %v1244_v11 = vadd.f32 %v1240_v4, %v1141_v59  ;;  %v1245_v1 = vmul.f32 0.70710677, %v1241_v60 }
 0x213   : > { %v1246_v2 = vmul.f32 0.70710677, %v1242_v62  ;;  %v1247_v3 = vmul.f32 0.70710677, %v1243_v63 }
 0x214   : > { %v1248_v12 = vmul.f32 0.70710677, %v1244_v11 }
 0x215   : > { %v1529_v5 = vpack.c.bf16 %v1246_v2, %v1245_v1  ;;  %v1189_v6 = vpop.f32.mrb[20].mxu0 }
 0x216   : > { %v1530_v8 = vpack.c.bf16 %v1248_v12, %v1247_v3  ;;  %v1230_v9 = vpop.f32.mrb[20].mxu1  ;;  %v1190_v10 = vadd.f32 %v1189_v6, %v1150_v7  ;;  %v1191_v13 = vpop.f32.mrb[21].mxu0 }
 0x217   : > { %1265 = vst [vmem:[%s577_s19] sm:$0xff] %v1529_v5  ;;  %v1231_v14 = vadd.f32 %v1230_v9, %v1150_v7  ;;  %v1192_v15 = vadd.f32 %v1191_v13, %v1150_v7  ;;  %v1232_v16 = vpop.f32.mrb[21].mxu1  ;;  %v1193_v17 = vpop.f32.mrb[22].mxu0 }
 0x218   : > { %1266 = vst [vmem:[%s577_s19 + $0x8] sm:$0xff] %v1530_v8  ;;  %v1233_v18 = vadd.f32 %v1232_v16, %v1150_v7  ;;  %v1234_v19 = vpop.f32.mrb[22].mxu1  ;;  %v1194_v20 = vpop.f32.mrb[23].mxu0 }
 0x219   : > { %v1531_v21 = vpack.c.bf16 %v1192_v15, %v1190_v10  ;;  %v1235_v22 = vpop.f32.mrb[23].mxu1 }
 0x21a   : > { %v1532_v23 = vpack.c.bf16 %v1233_v18, %v1231_v14 }
 0x21b   : > { %1283 = vst [vmem:[%s587_s17] sm:$0xff] %v1531_v21 }
 0x21c   : > { %1284 = vst [vmem:[%s587_s17 + $0x8] sm:$0xff] %v1532_v23 }
 0x21d PF: > { %s24_s14 = sadd.s32 1, %s1680_s14   ;;  %s1962_s18 = sld [smem:[#allocation3_spill]] }
 0x21e   : > { %p21_p12 = scmp.ge.s32.totalorder %s24_s14, 6   ;;  %s1963_s9 = sld [smem:[#allocation4_spill]] }
 0x21f   : > { %s1964_s25 = smov %s1660_s26  ;;  %s1965_s26 = smov %s1804_s21 }
 0x220   : > { %s1966_s27 = smov %s1672_s29  ;;  %s1967_s28 = smov %s1676_s30 }
 0x221   :  { %23 = sbr.rel (!%p21_p12) target bundleno = 8 (0x8), region = 147 }
 0x223   : > { %s1968_s29 = smov %s1962_s18 }
 0x224   : > { %s1969_s30 = smov %s1963_s9 }

</bundles_post_ra>
